<compile_context>
chip_gen: v5e
topology: v5e:2x2
jax: 0.10.0
libtpu: 0.0.40
codegen_flags: <defaults>
</compile_context>

<pallas_src>
import functools

import jax
import jax.numpy as jnp
from jax.experimental import pallas as pl
from jax.experimental.pallas import tpu as pltpu

_SAMPLES_PER_ROW = 16   # 16 samples x 8 padded features = 128 lanes
_FEAT_PAD = 8           # features per sample, zero-padded to 8 lanes per layer


def mlp_kernel(x_ref, w1_ref, b1_ref, w2_ref, b2_ref, w3_ref, b3_ref, o_ref):
    # x_ref: (rows, 128) tile; 16 samples per 128-lane row.
    x = x_ref[...]
    h1 = jax.nn.sigmoid(
        jnp.dot(x, w1_ref[...], preferred_element_type=jnp.float32) + b1_ref[...])
    h2 = jax.nn.sigmoid(
        jnp.dot(h1, w2_ref[...], preferred_element_type=jnp.float32) + b2_ref[...])
    y = jax.nn.sigmoid(
        jnp.dot(h2, w3_ref[...], preferred_element_type=jnp.float32) + b3_ref[...])
    o_ref[...] = y.astype(o_ref.dtype)            # (rows, 16): one value per sample


def _round_up(v, m):
    return ((v + m - 1) // m) * m


def _pack_weight(w, out_cols):
    """Block-diagonal (128, 16*out_cols) weight: 16 copies of zero-padded w."""
    fan_in, fan_out = w.shape
    blk = jnp.zeros((_FEAT_PAD, out_cols), jnp.float32).at[:fan_in, :fan_out].set(
        w.astype(jnp.float32))
    return jnp.kron(jnp.eye(_SAMPLES_PER_ROW, dtype=jnp.float32), blk)


def _pack_bias(b, out_cols):
    """(1, 16*out_cols) bias: 16 copies of the zero-padded bias vector."""
    fan_out = b.size
    blk = jnp.zeros((out_cols,), jnp.float32).at[:fan_out].set(
        b.reshape(-1).astype(jnp.float32))
    return jnp.tile(blk, _SAMPLES_PER_ROW).reshape(1, _SAMPLES_PER_ROW * out_cols)


@functools.partial(jax.jit, static_argnames=("max_tile_samples",))
def mlp_forward(x, w1, b1, w2, b2, w3, b3, *, max_tile_samples=65536):
    """y = sigmoid(sigmoid(sigmoid(x @ W1 + b1) @ W2 + b2) @ W3 + b3), x: (N, 8)."""
    n, d = x.shape
    assert d == 8

    # Lane-packed view of x: (rows, 128).  Pad only a ragged tail (min 128 samples so
    # the smallest (8, 128) block fits); when N is already aligned this is a free view.
    n_pad = max(128, _round_up(n, _SAMPLES_PER_ROW))
    x32 = x.astype(jnp.float32)
    if n_pad != n:
        x32 = jnp.pad(x32, ((0, n_pad - n), (0, 0)))
    rows_total = n_pad // _SAMPLES_PER_ROW
    x_rows = x32.reshape(rows_total, 128)

    # Grid / tile selection: rows per step is a multiple of 8, never larger than the
    # array, capped by max_tile_samples, and sized for >= ~8 grid steps when possible
    # (keeps both v7x TensorCores busy and the DMA pipeline overlapped).
    max_rows = max(8, (max_tile_samples // 128) * 8)
    target_rows = _round_up(pl.cdiv(rows_total, 8), 8)
    rows_per_tile = max(8, min(max_rows, target_rows, (rows_total // 8) * 8))
    grid_len = pl.cdiv(rows_total, rows_per_tile)

    # Once-per-call packed parameters (tiny; stay VMEM-resident across grid steps).
    w1_big = _pack_weight(w1, 8)        # (128, 128)
    b1_big = _pack_bias(b1, 8)          # (1, 128)
    w2_big = _pack_weight(w2, 8)        # (128, 128)
    b2_big = _pack_bias(b2, 8)          # (1, 128)
    w3_sel = _pack_weight(w3, 1)        # (128, 16)  layer 3 + lane compaction fused
    b3_sel = _pack_bias(b3, 1)          # (1, 16)

    def const(shape):
        return pl.BlockSpec(shape, lambda i: (0, 0))   # same block every step -> no re-DMA

    out = pl.pallas_call(
        mlp_kernel,
        out_shape=jax.ShapeDtypeStruct((rows_total, _SAMPLES_PER_ROW), jnp.float32),
        grid=(grid_len,),
        in_specs=[
            pl.BlockSpec((rows_per_tile, 128), lambda i: (i, 0)),   # x, pipelined over N
            const((128, 128)), const((1, 128)),                     # W1, b1
            const((128, 128)), const((1, 128)),                     # W2, b2
            const((128, 16)), const((1, 16)),                       # W3 (+select), b3
        ],
        out_specs=pl.BlockSpec((rows_per_tile, _SAMPLES_PER_ROW), lambda i: (i, 0)),
        compiler_params=pltpu.CompilerParams(
            dimension_semantics=("parallel",),           # shard grid across TCs (v7x)
        ),
    )(x_rows, w1_big, b1_big, w2_big, b2_big, w3_sel, b3_sel)

    # (rows, 16) -> (n_pad, 1) is a free row-major view; drop the padded tail samples.
    return out.reshape(n_pad, 1)[:n]


def init_params(key):
    # Deterministic init mimicking PyTorch Linear: U(-1/sqrt(fan_in), 1/sqrt(fan_in)).
    # Weights stored transposed vs. PyTorch, i.e. shape (in, out), so y = x @ W + b.
    dims = [(8, 6), (6, 4), (4, 1)]
    params = []
    for i, (fan_in, fan_out) in enumerate(dims):
        kw, kb = jax.random.split(jax.random.fold_in(key, i))
        bound = 1.0 / (fan_in ** 0.5)
        w = jax.random.uniform(kw, (fan_in, fan_out), jnp.float32, -bound, bound)
        b = jax.random.uniform(kb, (1, fan_out), jnp.float32, -bound, bound)
        params += [w, b]
    return params


def reference_forward(x, w1, b1, w2, b2, w3, b3):
    h1 = jax.nn.sigmoid(x @ w1 + b1)
    h2 = jax.nn.sigmoid(h1 @ w2 + b2)
    return jax.nn.sigmoid(h2 @ w3 + b3)


if __name__ == "__main__":
    key = jax.random.PRNGKey(0)
    kx, kp = jax.random.split(key)
    w1, b1, w2, b2, w3, b3 = init_params(kp)

    # Tolerance covers possible bf16 MXU passes at default TPU matmul precision.
    ATOL = 2e-3

    # 1) Tiny batch (8): single tile, exercises the sample-padding path.
    x_small = jax.random.normal(kx, (8, 8), jnp.float32)
    y_small = mlp_forward(x_small, w1, b1, w2, b2, w3, b3)
    jax.block_until_ready(y_small)
    y_ref = reference_forward(x_small, w1, b1, w2, b2, w3, b3)
    assert y_small.shape == (8, 1)
    assert jnp.allclose(y_small, y_ref, atol=ATOL, rtol=0.0)

    # 2) Batch 300 with a small tile cap: 3-step grid with a ragged boundary block.
    x_mid = jax.random.normal(jax.random.fold_in(kx, 1), (300, 8), jnp.float32)
    y_mid = mlp_forward(x_mid, w1, b1, w2, b2, w3, b3, max_tile_samples=128)
    jax.block_until_ready(y_mid)
    y_ref = reference_forward(x_mid, w1, b1, w2, b2, w3, b3)
    assert y_mid.shape == (300, 1)
    assert jnp.allclose(y_mid, y_ref, atol=ATOL, rtol=0.0)

    # 3) Batch 1024, tile cap 256 samples: 8-step pipelined grid, no padding at all.
    x_big = jax.random.normal(jax.random.fold_in(kx, 2), (1024, 8), jnp.float32)
    y_big = mlp_forward(x_big, w1, b1, w2, b2, w3, b3, max_tile_samples=256)
    jax.block_until_ready(y_big)
    y_ref = reference_forward(x_big, w1, b1, w2, b2, w3, b3)
    assert y_big.shape == (1024, 1)
    assert jnp.allclose(y_big, y_ref, atol=ATOL, rtol=0.0)

    print("KERNEL_OK")
</pallas_src>

<mosaic_0001>
module attributes {stable_mosaic.version = 11 : i64} {
  func.func @mlp_kernel(%arg0: i32, %arg1: memref<8x128xf32, #tpu.memory_space<vmem>>, %arg2: memref<128x128xf32, #tpu.memory_space<vmem>>, %arg3: memref<1x128xf32, #tpu.memory_space<vmem>>, %arg4: memref<128x128xf32, #tpu.memory_space<vmem>>, %arg5: memref<1x128xf32, #tpu.memory_space<vmem>>, %arg6: memref<128x16xf32, #tpu.memory_space<vmem>>, %arg7: memref<1x16xf32, #tpu.memory_space<vmem>>, %arg8: memref<8x16xf32, #tpu.memory_space<vmem>>) attributes {dimension_semantics = [#tpu.dimension_semantics<parallel>], iteration_bounds = array<i64: 1>, scalar_prefetch = 0 : i64, scratch_operands = 0 : i64, tpu.core_type = #tpu.core_type<tc>, window_params = [{transform_indices = @transform_0, window_bounds = array<i64: 8, 128>}, {pipeline_mode = #tpu.pipeline_mode<synchronous>, transform_indices = @transform_1, window_bounds = array<i64: 128, 128>}, {pipeline_mode = #tpu.pipeline_mode<synchronous>, transform_indices = @transform_2, window_bounds = array<i64: 1, 128>}, {pipeline_mode = #tpu.pipeline_mode<synchronous>, transform_indices = @transform_3, window_bounds = array<i64: 128, 128>}, {pipeline_mode = #tpu.pipeline_mode<synchronous>, transform_indices = @transform_4, window_bounds = array<i64: 1, 128>}, {pipeline_mode = #tpu.pipeline_mode<synchronous>, transform_indices = @transform_5, window_bounds = array<i64: 128, 16>}, {pipeline_mode = #tpu.pipeline_mode<synchronous>, transform_indices = @transform_6, window_bounds = array<i64: 1, 16>}, {transform_indices = @transform_7, window_bounds = array<i64: 8, 16>}]} {
    %c0 = arith.constant 0 : index
    %c0_0 = arith.constant 0 : index
    %0 = vector.load %arg1[%c0, %c0_0] : memref<8x128xf32, #tpu.memory_space<vmem>>, vector<8x128xf32>
    %c0_1 = arith.constant 0 : index
    %c0_2 = arith.constant 0 : index
    %1 = vector.load %arg2[%c0_1, %c0_2] : memref<128x128xf32, #tpu.memory_space<vmem>>, vector<128x128xf32>
    %cst = arith.constant dense<0.000000e+00> : vector<8x128xf32>
    %2 = tpu.matmul %0, %1, %cst {dimension_numbers = #tpu.dot_dimension_numbers<[1], [0], [0], [1], [0, 0, 1, 1], [], []>} : vector<8x128xf32>, vector<128x128xf32>, vector<8x128xf32> -> vector<8x128xf32>
    %c0_3 = arith.constant 0 : index
    %c0_4 = arith.constant 0 : index
    %3 = vector.load %arg3[%c0_3, %c0_4] : memref<1x128xf32, #tpu.memory_space<vmem>>, vector<1x128xf32>
    %4 = vector.broadcast %3 : vector<1x128xf32> to vector<8x128xf32>
    %5 = arith.addf %2, %4 : vector<8x128xf32>
    %6 = arith.negf %5 : vector<8x128xf32>
    %7 = math.exp %6 : vector<8x128xf32>
    %cst_5 = arith.constant 1.000000e+00 : f32
    %8 = vector.broadcast %cst_5 : f32 to vector<8x128xf32>
    %9 = arith.addf %8, %7 : vector<8x128xf32>
    %10 = arith.divf %8, %9 : vector<8x128xf32>
    %c0_6 = arith.constant 0 : index
    %c0_7 = arith.constant 0 : index
    %11 = vector.load %arg4[%c0_6, %c0_7] : memref<128x128xf32, #tpu.memory_space<vmem>>, vector<128x128xf32>
    %cst_8 = arith.constant dense<0.000000e+00> : vector<8x128xf32>
    %12 = tpu.matmul %10, %11, %cst_8 {dimension_numbers = #tpu.dot_dimension_numbers<[1], [0], [0], [1], [0, 0, 1, 1], [], []>} : vector<8x128xf32>, vector<128x128xf32>, vector<8x128xf32> -> vector<8x128xf32>
    %c0_9 = arith.constant 0 : index
    %c0_10 = arith.constant 0 : index
    %13 = vector.load %arg5[%c0_9, %c0_10] : memref<1x128xf32, #tpu.memory_space<vmem>>, vector<1x128xf32>
    %14 = vector.broadcast %13 : vector<1x128xf32> to vector<8x128xf32>
    %15 = arith.addf %12, %14 : vector<8x128xf32>
    %16 = arith.negf %15 : vector<8x128xf32>
    %17 = math.exp %16 : vector<8x128xf32>
    %cst_11 = arith.constant 1.000000e+00 : f32
    %18 = vector.broadcast %cst_11 : f32 to vector<8x128xf32>
    %19 = arith.addf %18, %17 : vector<8x128xf32>
    %20 = arith.divf %18, %19 : vector<8x128xf32>
    %c0_12 = arith.constant 0 : index
    %c0_13 = arith.constant 0 : index
    %21 = vector.load %arg6[%c0_12, %c0_13] : memref<128x16xf32, #tpu.memory_space<vmem>>, vector<128x16xf32>
    %cst_14 = arith.constant dense<0.000000e+00> : vector<8x16xf32>
    %22 = tpu.matmul %20, %21, %cst_14 {dimension_numbers = #tpu.dot_dimension_numbers<[1], [0], [0], [1], [0, 0, 1, 1], [], []>} : vector<8x128xf32>, vector<128x16xf32>, vector<8x16xf32> -> vector<8x16xf32>
    %c0_15 = arith.constant 0 : index
    %c0_16 = arith.constant 0 : index
    %23 = vector.load %arg7[%c0_15, %c0_16] : memref<1x16xf32, #tpu.memory_space<vmem>>, vector<1x16xf32>
    %24 = vector.broadcast %23 : vector<1x16xf32> to vector<8x16xf32>
    %25 = arith.addf %22, %24 : vector<8x16xf32>
    %26 = arith.negf %25 : vector<8x16xf32>
    %27 = math.exp %26 : vector<8x16xf32>
    %cst_17 = arith.constant 1.000000e+00 : f32
    %28 = vector.broadcast %cst_17 : f32 to vector<8x16xf32>
    %29 = arith.addf %28, %27 : vector<8x16xf32>
    %30 = arith.divf %28, %29 : vector<8x16xf32>
    %c0_18 = arith.constant 0 : index
    %c0_19 = arith.constant 0 : index
    %31 = vector.load %arg8[%c0_18, %c0_19] : memref<8x16xf32, #tpu.memory_space<vmem>>, vector<8x16xf32>
    tpu.vector_store %arg8[%c0_18, %c0_19], %30 {strides = array<i32>} : memref<8x16xf32, #tpu.memory_space<vmem>>, vector<8x16xf32>,
    return
  }
  func.func @transform_0(%arg0: i32) -> (i32, i32) {
    %c0_i32 = arith.constant 0 : i32
    %c0_i32_0 = arith.constant 0 : i32
    return %arg0, %c0_i32 : i32, i32
  }
  func.func @transform_1(%arg0: i32) -> (i32, i32) {
    %c0_i32 = arith.constant 0 : i32
    %c0_i32_0 = arith.constant 0 : i32
    %c0_i32_1 = arith.constant 0 : i32
    return %c0_i32, %c0_i32_0 : i32, i32
  }
  func.func @transform_2(%arg0: i32) -> (i32, i32) {
    %c0_i32 = arith.constant 0 : i32
    %c0_i32_0 = arith.constant 0 : i32
    %c0_i32_1 = arith.constant 0 : i32
    return %c0_i32, %c0_i32_0 : i32, i32
  }
  func.func @transform_3(%arg0: i32) -> (i32, i32) {
    %c0_i32 = arith.constant 0 : i32
    %c0_i32_0 = arith.constant 0 : i32
    %c0_i32_1 = arith.constant 0 : i32
    return %c0_i32, %c0_i32_0 : i32, i32
  }
  func.func @transform_4(%arg0: i32) -> (i32, i32) {
    %c0_i32 = arith.constant 0 : i32
    %c0_i32_0 = arith.constant 0 : i32
    %c0_i32_1 = arith.constant 0 : i32
    return %c0_i32, %c0_i32_0 : i32, i32
  }
  func.func @transform_5(%arg0: i32) -> (i32, i32) {
    %c0_i32 = arith.constant 0 : i32
    %c0_i32_0 = arith.constant 0 : i32
    %c0_i32_1 = arith.constant 0 : i32
    return %c0_i32, %c0_i32_0 : i32, i32
  }
  func.func @transform_6(%arg0: i32) -> (i32, i32) {
    %c0_i32 = arith.constant 0 : i32
    %c0_i32_0 = arith.constant 0 : i32
    %c0_i32_1 = arith.constant 0 : i32
    return %c0_i32, %c0_i32_0 : i32, i32
  }
  func.func @transform_7(%arg0: i32) -> (i32, i32) {
    %c0_i32 = arith.constant 0 : i32
    %c0_i32_0 = arith.constant 0 : i32
    return %arg0, %c0_i32 : i32, i32
  }
}

</mosaic_0001>

<bundles_post_ra>
// kernel: tile.19
= control target key start
LH: loop header
LB: loop body
LE: loop exit
PB: predicated region body
PF: predicated region fallthrough
CT: control target
= control target key end

     0   :  { %s131_s10 = smov 120   ;;  %s132_s11 = smov 104   ;;  %vm3_vm0 = vcmask 64512   ;;  %vm9_vm1 = vcmask 1048512   ;;  %vm15_vm2 = vcmask 982912   ;;  %vm21_vm3 = vcmask 917312   ;;  %s207_s0 = inlined_call_operand.vmem [shape: f32[16,8], index: 0, kind: input, shape index: {}]   ;;  %s208_s1 = inlined_call_operand.vmem [shape: f32[1,128], index: 1, kind: output, shape index: {}]  }
   0x1   :  { %v101_v0 = vld [vmem:[%s207_s0 + $0xf] sm:$0x1]   ;;  %v103_v1 = vld [vmem:[%s207_s0 + $0xd] sm:$0x1]   ;;  %v105_v2 = vld [vmem:[%s207_s0 + $0xb] sm:$0x1]  }
   0x2   :  { %7 = vrot.lane.b32.xlu0 %v101_v0, %s131_s10  ;;  %19 = vrot.lane.b32.xlu1 %v103_v1, %s132_s11  ;;  %s133_s14 = smov 88   ;;  %v102_v3 = vld [vmem:[%s207_s0 + $0xe] sm:$0x1]   ;;  %v104_v4 = vld [vmem:[%s207_s0 + $0xc] sm:$0x1]   ;;  %s134_s19 = smov 112  }
   0x3   :  { %31 = vrot.lane.b32.xlu2 %v105_v2, %s133_s14  ;;  %s135_s20 = smov 96   ;;  %v106_v5 = vld [vmem:[%s207_s0 + $0xa] sm:$0x1]   ;;  %s136_s23 = smov 80   ;;  %v107_v6 = vld [vmem:[%s207_s0 + $0x9] sm:$0x1]  }
   0x4   :  { %v108_v7 = vld [vmem:[%s207_s0 + $0x8] sm:$0x1]   ;;  %s137_s28 = smov 72   ;;  %s138_s29 = smov 64   ;;  %v109_v8 = vld [vmem:[%s207_s0 + $0x7] sm:$0x1]  }
   0x5   :  { %s139_s3 = smov 56   ;;  %v110_v9 = vld [vmem:[%s207_s0 + $0x6] sm:$0x1]   ;;  %v111_v10 = vld [vmem:[%s207_s0 + $0x5] sm:$0x1]   ;;  %s140_s8 = smov 48  }
   0x6   :  { %s141_s9 = smov 40   ;;  %v112_v11 = vld [vmem:[%s207_s0 + $0x4] sm:$0x1]   ;;  %s142_s12 = smov 32   ;;  %v113_v12 = vld [vmem:[%s207_s0 + $0x3] sm:$0x1]  }
   0x7   :  { %v114_v13 = vld [vmem:[%s207_s0 + $0x2] sm:$0x1]   ;;  %s143_s17 = smov 24   ;;  %s144_s18 = smov 16   ;;  %v115_v14 = vld [vmem:[%s207_s0 + $0x1] sm:$0x1]  }
   0x8   :  { %s145_s21 = smov 8   ;;  %v2_v15 = vld [vmem:[%s207_s0] sm:$0x1]   ;;  %vm27_vm4 = vcmask 851712   ;;  %vm33_vm5 = vcmask 786112   ;;  %vm39_vm6 = vcmask 720512  }
   0x9   :  { %4 = vst.msk [vmem:[#allocation0] sm:$0x1] %vm3_vm0, %v2_v15   ;;  %vm45_vm7 = vcmask 654912   ;;  %vm51_vm8 = vcmask 589312   ;;  %vm57_vm9 = vcmask 523712   ;;  %vm63_vm10 = vcmask 458112  }
   0xa   :  { %13 = vrot.lane.b32.xlu0 %v102_v3, %s134_s19  ;;  %25 = vrot.lane.b32.xlu1 %v104_v4, %s135_s20  ;;  %vm69_vm11 = vcmask 392512   ;;  %vm75_vm12 = vcmask 326912   ;;  %vm81_vm13 = vcmask 261312   ;;  %vm87_vm14 = vcmask 195712  }
   0xb   :  { %37 = vrot.lane.b32.xlu2 %v106_v5, %s136_s23  ;;  %vm93_vm15 = vcmask 130112  }
  0x12   :  { %43 = vrot.lane.b32.xlu0 %v107_v6, %s137_s28  ;;  %49 = vrot.lane.b32.xlu1 %v108_v7, %s138_s29 }
  0x13   :  { %55 = vrot.lane.b32.xlu2 %v109_v8, %s139_s3 }
  0x1a   :  { %61 = vrot.lane.b32.xlu0 %v110_v9, %s140_s8  ;;  %67 = vrot.lane.b32.xlu1 %v111_v10, %s141_s9 }
  0x1b   :  { %73 = vrot.lane.b32.xlu2 %v112_v11, %s142_s12 }
  0x22   :  { %79 = vrot.lane.b32.xlu0 %v113_v12, %s143_s17  ;;  %85 = vrot.lane.b32.xlu1 %v114_v13, %s144_s18 }
  0x23   :  { %91 = vrot.lane.b32.xlu2 %v115_v14, %s145_s21 }
  0x5d   :  { %v32_v16 = vpop.permute.xlu2 %31  }
  0x65   :  { %v38_v17 = vpop.permute.xlu2 %37  }
  0x6d   :  { %v56_v18 = vpop.permute.xlu2 %55  }
  0x74   :  { %v8_v19 = vpop.permute.xlu0 %7   ;;  %v20_v20 = vpop.permute.xlu1 %19  }
  0x75   :  { %10 = vst.msk [vmem:[#allocation0] sm:$0x1] %vm9_vm1, %v8_v19   ;;  %v74_v21 = vpop.permute.xlu2 %73  }
  0x7c   :  { %v14_v22 = vpop.permute.xlu0 %13   ;;  %v26_v23 = vpop.permute.xlu1 %25  }
  0x7d   :  { %16 = vst.msk [vmem:[#allocation0] sm:$0x1] %vm15_vm2, %v14_v22   ;;  %v92_v24 = vpop.permute.xlu2 %91  }
  0x7e   :  { %22 = vst.msk [vmem:[#allocation0] sm:$0x1] %vm21_vm3, %v20_v20  }
  0x7f   :  { %28 = vst.msk [vmem:[#allocation0] sm:$0x1] %vm27_vm4, %v26_v23  }
  0x80   :  { %34 = vst.msk [vmem:[#allocation0] sm:$0x1] %vm33_vm5, %v32_v16  }
  0x81   :  { %40 = vst.msk [vmem:[#allocation0] sm:$0x1] %vm39_vm6, %v38_v17  }
  0x84   :  { %v44_v25 = vpop.permute.xlu0 %43   ;;  %v50_v26 = vpop.permute.xlu1 %49  }
  0x85   :  { %46 = vst.msk [vmem:[#allocation0] sm:$0x1] %vm45_vm7, %v44_v25  }
  0x86   :  { %52 = vst.msk [vmem:[#allocation0] sm:$0x1] %vm51_vm8, %v50_v26  }
  0x87   :  { %58 = vst.msk [vmem:[#allocation0] sm:$0x1] %vm57_vm9, %v56_v18  }
  0x8c   :  { %v62_v27 = vpop.permute.xlu0 %61   ;;  %v68_v28 = vpop.permute.xlu1 %67  }
  0x8d   :  { %64 = vst.msk [vmem:[#allocation0] sm:$0x1] %vm63_vm10, %v62_v27  }
  0x8e   :  { %70 = vst.msk [vmem:[#allocation0] sm:$0x1] %vm69_vm11, %v68_v28  }
  0x8f   :  { %76 = vst.msk [vmem:[#allocation0] sm:$0x1] %vm75_vm12, %v74_v21  }
  0x94   :  { %v80_v29 = vpop.permute.xlu0 %79   ;;  %v86_v30 = vpop.permute.xlu1 %85  }
  0x95   :  { %82 = vst.msk [vmem:[#allocation0] sm:$0x1] %vm81_vm13, %v80_v29  }
  0x96   :  { %88 = vst.msk [vmem:[#allocation0] sm:$0x1] %vm87_vm14, %v86_v30  }
  0x97   :  { %94 = vst.msk [vmem:[#allocation0] sm:$0x1] %vm93_vm15, %v92_v24  }
  0x9e   :  { %v97_v31 = vld [vmem:[#allocation0] sm:$0x1] }
  0x9f   :  { %100 = vst [vmem:[%s208_s1] sm:$0x1] %v97_v31 }

// kernel: mlp_forward.1
= control target key start
LH: loop header
LB: loop body
LE: loop exit
PB: predicated region body
PF: predicated region fallthrough
CT: control target
= control target key end

     0   :  { %vm204_vm11 = vcmask 130048   ;;  %s427_s1 = inlined_call_operand.vmem [shape: f32[128,128], index: 1, kind: input, shape index: {}]   ;;  %s428_s2 = inlined_call_operand.vmem [shape: f32[1,128], index: 2, kind: input, shape index: {}]   ;;  %s429_s0 = inlined_call_operand.vmem [shape: f32[8,128], index: 0, kind: input, shape index: {}]   ;;  %s430_s4 = inlined_call_operand.vmem [shape: f32[1,128], index: 4, kind: input, shape index: {}]   ;;  %s431_s3 = inlined_call_operand.vmem [shape: f32[128,128], index: 3, kind: input, shape index: {}]   ;;  %s432_s6 = inlined_call_operand.vmem [shape: f32[1,16], index: 6, kind: input, shape index: {}]   ;;  %s433_s5 = inlined_call_operand.vmem [shape: f32[128,16], index: 5, kind: input, shape index: {}]   ;;  %s434_s7 = inlined_call_operand.vmem [shape: f32[8,16], index: 7, kind: output, shape index: {}]  }
   0x1   :  { %v42_v0 = vld [vmem:[%s427_s1 + $0x78] sm:$0xff]  ;;  %v41_v1 = vld [vmem:[%s427_s1 + $0x70] sm:$0xff]  ;;  %v40_v2 = vld [vmem:[%s427_s1 + $0x68] sm:$0xff] }
   0x2   :  { %47 = vmatpush.msra.mxu0 %v42_v0  ;;  %v39_v3 = vld [vmem:[%s427_s1 + $0x60] sm:$0xff]  ;;  %v38_v4 = vld [vmem:[%s427_s1 + $0x58] sm:$0xff]  ;;  %v37_v5 = vld [vmem:[%s427_s1 + $0x50] sm:$0xff] }
   0x3   :  { %v36_v6 = vld [vmem:[%s427_s1 + $0x48] sm:$0xff]  ;;  %v35_v7 = vld [vmem:[%s427_s1 + $0x40] sm:$0xff]  ;;  %v34_v8 = vld [vmem:[%s427_s1 + $0x38] sm:$0xff] }
   0x4   :  { %48 = vmatpush.msra.mxu0 %v41_v1  ;;  %v33_v9 = vld [vmem:[%s427_s1 + $0x30] sm:$0xff]  ;;  %v32_v10 = vld [vmem:[%s427_s1 + $0x28] sm:$0xff]  ;;  %v31_v11 = vld [vmem:[%s427_s1 + $0x20] sm:$0xff] }
   0x5   :  { %v30_v12 = vld [vmem:[%s427_s1 + $0x18] sm:$0xff]  ;;  %v29_v13 = vld [vmem:[%s427_s1 + $0x10] sm:$0xff]  ;;  %v28_v14 = vld [vmem:[%s427_s1 + $0x8] sm:$0xff] }
   0x6   :  { %49 = vmatpush.msra.mxu0 %v40_v2  ;;  %v27_v15 = vld [vmem:[%s427_s1] sm:$0xff]  ;;  %v101_v17 = vld [vmem:[%s431_s3 + $0x78] sm:$0xff]  ;;  %v100_v18 = vld [vmem:[%s431_s3 + $0x70] sm:$0xff] }
   0x7   :  { %v26_v16 = vld [vmem:[%s429_s0] sm:$0xff]  ;;  %106 = vmatpush.msra.mxu1 %v101_v17  ;;  %v99_v19 = vld [vmem:[%s431_s3 + $0x68] sm:$0xff]  ;;  %v97_v21 = vld [vmem:[%s431_s3 + $0x58] sm:$0xff] }
   0x8   :  { %50 = vmatpush.msra.mxu0 %v39_v3  ;;  %v98_v20 = vld [vmem:[%s431_s3 + $0x60] sm:$0xff]  ;;  %v96_v22 = vld [vmem:[%s431_s3 + $0x50] sm:$0xff]  ;;  %v95_v23 = vld [vmem:[%s431_s3 + $0x48] sm:$0xff] }
   0x9   :  { %107 = vmatpush.msra.mxu1 %v100_v18  ;;  %v94_v24 = vld [vmem:[%s431_s3 + $0x40] sm:$0xff]  ;;  %v93_v25 = vld [vmem:[%s431_s3 + $0x38] sm:$0xff]  ;;  %v92_v26 = vld [vmem:[%s431_s3 + $0x30] sm:$0xff] }
   0xa   :  { %51 = vmatpush.msra.mxu0 %v38_v4  ;;  %v91_v27 = vld [vmem:[%s431_s3 + $0x28] sm:$0xff]  ;;  %v90_v28 = vld [vmem:[%s431_s3 + $0x20] sm:$0xff]  ;;  %v89_v29 = vld [vmem:[%s431_s3 + $0x18] sm:$0xff] }
   0xb   :  { %108 = vmatpush.msra.mxu1 %v99_v19  ;;  %v88_v30 = vld [vmem:[%s431_s3 + $0x10] sm:$0xff]  ;;  %v87_v31 = vld [vmem:[%s431_s3 + $0x8] sm:$0xff]  ;;  %v86_v32 = vld [vmem:[%s431_s3] sm:$0xff] }
   0xc   :  { %52 = vmatpush.msra.mxu0 %v37_v5  ;;  %v213_v33 = vld [vmem:[%s428_s2] ss:$0 sm:$0xff]  ;;  %v160_v49 = vld [vmem:[%s433_s5 + $0x78] sm:$0xff]  ;;  %v159_v50 = vld [vmem:[%s433_s5 + $0x70] sm:$0xff] }
   0xd   :  { %109 = vmatpush.msra.mxu1 %v98_v20  ;;  %165 = vmatpush.msra.mxu2 %v160_v49  ;;  %v158_v51 = vld [vmem:[%s433_s5 + $0x68] sm:$0xff]  ;;  %v157_v52 = vld [vmem:[%s433_s5 + $0x60] sm:$0xff]  ;;  %v156_v53 = vld [vmem:[%s433_s5 + $0x58] sm:$0xff] }
   0xe   :  { %53 = vmatpush.msra.mxu0 %v36_v6  ;;  %v155_v54 = vld [vmem:[%s433_s5 + $0x50] sm:$0xff]  ;;  %v154_v55 = vld [vmem:[%s433_s5 + $0x48] sm:$0xff]  ;;  %v153_v56 = vld [vmem:[%s433_s5 + $0x40] sm:$0xff] }
   0xf   :  { %110 = vmatpush.msra.mxu1 %v97_v21  ;;  %166 = vmatpush.msra.mxu2 %v159_v50  ;;  %v152_v57 = vld [vmem:[%s433_s5 + $0x38] sm:$0xff]  ;;  %v151_v58 = vld [vmem:[%s433_s5 + $0x30] sm:$0xff]  ;;  %v150_v59 = vld [vmem:[%s433_s5 + $0x28] sm:$0xff] }
  0x10   :  { %54 = vmatpush.msra.mxu0 %v35_v7  ;;  %v149_v60 = vld [vmem:[%s433_s5 + $0x20] sm:$0xff]  ;;  %v148_v61 = vld [vmem:[%s433_s5 + $0x18] sm:$0xff]  ;;  %v147_v62 = vld [vmem:[%s433_s5 + $0x10] sm:$0xff] }
  0x11   :  { %111 = vmatpush.msra.mxu1 %v96_v22  ;;  %167 = vmatpush.msra.mxu2 %v158_v51  ;;  %v146_v63 = vld [vmem:[%s433_s5 + $0x8] sm:$0xff]  ;;  %v145_v0 = vld [vmem:[%s433_s5] sm:$0xff] }
  0x12   :  { %55 = vmatpush.msra.mxu0 %v34_v8  ;;  %v214_v1 = vld [vmem:[%s430_s4] ss:$0 sm:$0xff] }
  0x13   :  { %112 = vmatpush.msra.mxu1 %v95_v23  ;;  %168 = vmatpush.msra.mxu2 %v157_v52  ;;  %v215_v17 = vld [vmem:[%s432_s6] ss:$0 sm:$0xff] }
  0x14   :  { %56 = vmatpush.msra.mxu0 %v33_v9 }
  0x15   :  { %113 = vmatpush.msra.mxu1 %v94_v24  ;;  %169 = vmatpush.msra.mxu2 %v156_v53 }
  0x16   :  { %57 = vmatpush.msra.mxu0 %v32_v10 }
  0x17   :  { %114 = vmatpush.msra.mxu1 %v93_v25  ;;  %170 = vmatpush.msra.mxu2 %v155_v54 }
  0x18   :  { %58 = vmatpush.msra.mxu0 %v31_v11 }
  0x19   :  { %115 = vmatpush.msra.mxu1 %v92_v26  ;;  %171 = vmatpush.msra.mxu2 %v154_v55 }
  0x1a   :  { %59 = vmatpush.msra.mxu0 %v30_v12 }
  0x1b   :  { %116 = vmatpush.msra.mxu1 %v91_v27  ;;  %172 = vmatpush.msra.mxu2 %v153_v56 }
  0x1c   :  { %60 = vmatpush.msra.mxu0 %v29_v13 }
  0x1d   :  { %117 = vmatpush.msra.mxu1 %v90_v28  ;;  %173 = vmatpush.msra.mxu2 %v152_v57 }
  0x1e   :  { %61 = vmatpush.msra.mxu0 %v28_v14 }
  0x1f   :  { %118 = vmatpush.msra.mxu1 %v89_v29  ;;  %174 = vmatpush.msra.mxu2 %v151_v58 }
  0x20   :  { %62 = vmatpush.msra.mxu0 %v27_v15 }
  0x21   :  { %63 = vmatmul.f32.vlgmr.msra.gmra.mxu0 %v26_v16  ;;  %119 = vmatpush.msra.mxu1 %v88_v30 }
  0x22   :  { %175 = vmatpush.msra.mxu2 %v150_v59 }
  0x23   :  { %120 = vmatpush.msra.mxu1 %v87_v31 }
  0x24   :  { %176 = vmatpush.msra.mxu2 %v149_v60 }
  0x25   :  { %121 = vmatpush.msra.mxu1 %v86_v32 }
  0x26   :  { %177 = vmatpush.msra.mxu2 %v148_v61 }
  0x28   :  { %178 = vmatpush.msra.mxu2 %v147_v62 }
  0x2a   :  { %179 = vmatpush.msra.mxu2 %v146_v63 }
  0x2c   :  { %180 = vmatpush.msra.mxu2 %v145_v0 }
  0x9e   :  { %v64_v34 = vpop.f32.mrf.mxu0 }
  0x9f   :  { %v65_v35 = vadd.f32 %v213_v33, %v64_v34 }
  0xa1   :  { %v210_v36 = vmul.f32 -1.442695, %v65_v35 }
  0xa3   :  { %216 = vpow2.f32 %v210_v36 }
  0xa9   :  { %v217_v37 = vpop.eup %216 }
  0xaa   :  { %v70_v38 = vadd.f32 1.0, %v217_v37 }
  0xac   :  { %218 = vrcp.f32 %v70_v38  ;;  %v82_v42 = vand.u32 2147483648, %v70_v38  ;;  %v80_v44 = vand.u32 2147483647, %v70_v38  ;;  %vm76_vm1 = vweird.f32 %v70_v38 }
  0xae   :  { %v83_v46 = vor.u32 1.1754944e-38, %v82_v42  ;;  %vm81_vm3 = vcmp.eq.f32.partialorder %v80_v44, 8.507059e+37 }
  0xb2   :  { %v219_v39 = vpop.eup %218 }
  0xb3   :  { %v72_v40 = vmul.f32 %v219_v39, %v70_v38  ;;  %vm77_vm0 = vweird.f32 %v219_v39 }
  0xb4   :  { %vm78_vm2 = vmor %vm76_vm1, %vm77_vm0 }
  0xb5   :  { %v73_v41 = vsub.f32 1.0, %v72_v40 }
  0xb7   :  { %v74_v43 = vmul.f32 %v219_v39, %v73_v41 }
  0xb9   :  { %v75_v45 = vadd.f32 %v219_v39, %v74_v43 }
  0xbb   :  { %v79_v47 = vsel %vm78_vm2, %v219_v39, %v75_v45 }
  0xbc   :  { %v84_v48 = vsel %vm81_vm3, %v83_v46, %v79_v47 }
  0xbd   :  { %122 = vmatmul.f32.vlgmr.msra.gmra.mxu1 %v84_v48 }
 0x13a   :  { %v123_v2 = vpop.f32.mrf.mxu1 }
 0x13b   :  { %v124_v3 = vadd.f32 %v214_v1, %v123_v2 }
 0x13d   :  { %v211_v4 = vmul.f32 -1.442695, %v124_v3 }
 0x13f   :  { %220 = vpow2.f32 %v211_v4 }
 0x145   :  { %v221_v5 = vpop.eup %220 }
 0x146   :  { %v129_v6 = vadd.f32 1.0, %v221_v5 }
 0x148   :  { %222 = vrcp.f32 %v129_v6  ;;  %v141_v10 = vand.u32 2147483648, %v129_v6  ;;  %v139_v12 = vand.u32 2147483647, %v129_v6  ;;  %vm135_vm5 = vweird.f32 %v129_v6 }
 0x14a   :  { %v142_v14 = vor.u32 1.1754944e-38, %v141_v10  ;;  %vm140_vm7 = vcmp.eq.f32.partialorder %v139_v12, 8.507059e+37 }
 0x14e   :  { %v223_v7 = vpop.eup %222 }
 0x14f   :  { %v131_v8 = vmul.f32 %v223_v7, %v129_v6  ;;  %vm136_vm4 = vweird.f32 %v223_v7 }
 0x150   :  { %vm137_vm6 = vmor %vm135_vm5, %vm136_vm4 }
 0x151   :  { %v132_v9 = vsub.f32 1.0, %v131_v8 }
 0x153   :  { %v133_v11 = vmul.f32 %v223_v7, %v132_v9 }
 0x155   :  { %v134_v13 = vadd.f32 %v223_v7, %v133_v11 }
 0x157   :  { %v138_v15 = vsel %vm137_vm6, %v223_v7, %v134_v13 }
 0x158   :  { %v143_v16 = vsel %vm140_vm7, %v142_v14, %v138_v15 }
 0x159   :  { %181 = vmatmul.f32.vlgmr.msra.gmra.mxu2 %v143_v16 }
 0x1dc   :  { %v182_v18 = vpop.f32.mrf.mxu2 }
 0x1dd   :  { %v183_v19 = vadd.f32 %v215_v17, %v182_v18 }
 0x1df   :  { %v212_v20 = vmul.f32 -1.442695, %v183_v19 }
 0x1e1   :  { %224 = vpow2.f32 %v212_v20 }
 0x1e7   :  { %v225_v21 = vpop.eup %224 }
 0x1e8   :  { %v188_v22 = vadd.f32 1.0, %v225_v21 }
 0x1ea   :  { %226 = vrcp.f32 %v188_v22  ;;  %v200_v26 = vand.u32 2147483648, %v188_v22  ;;  %v198_v28 = vand.u32 2147483647, %v188_v22  ;;  %vm194_vm9 = vweird.f32 %v188_v22 }
 0x1ec   :  { %v201_v30 = vor.u32 1.1754944e-38, %v200_v26  ;;  %vm199_vm12 = vcmp.eq.f32.partialorder %v198_v28, 8.507059e+37 }
 0x1f0   :  { %v227_v23 = vpop.eup %226 }
 0x1f1   :  { %v190_v24 = vmul.f32 %v227_v23, %v188_v22  ;;  %vm195_vm8 = vweird.f32 %v227_v23 }
 0x1f2   :  { %vm196_vm10 = vmor %vm194_vm9, %vm195_vm8 }
 0x1f3   :  { %v191_v25 = vsub.f32 1.0, %v190_v24 }
 0x1f5   :  { %v192_v27 = vmul.f32 %v227_v23, %v191_v25 }
 0x1f7   :  { %v193_v29 = vadd.f32 %v227_v23, %v192_v27 }
 0x1f9   :  { %v197_v31 = vsel %vm196_vm10, %v227_v23, %v193_v29 }
 0x1fa   :  { %v202_v32 = vsel %vm199_vm12, %v201_v30, %v197_v31 }
 0x1fb   :  { %205 = vst.msk [vmem:[%s434_s7] sm:$0xff] %vm204_vm11, %v202_v32 }

</bundles_post_ra>
